<compile_context>
chip_gen: v5e
topology: v5e:2x2
jax: 0.10.0
libtpu: 0.0.40
codegen_flags: <defaults>
</compile_context>

<pallas_src>
import functools

import jax
import jax.numpy as jnp
from jax import lax
from jax.experimental import pallas as pl
from jax.experimental.pallas import tpu as pltpu


def _round_up(x, m):
    return (x + m - 1) // m * m


def _cdiv(a, b):
    return -(-a // b)


def _maybe_buffered_spec(block_shape, index_map, buffer_count):
    """BlockSpec with deeper pipelining on the streamed input when useful."""
    if buffer_count is not None and buffer_count > 2:
        try:
            return pl.BlockSpec(block_shape, index_map,
                                pipeline_mode=pl.Buffered(buffer_count))
        except (TypeError, AttributeError):
            pass
    return pl.BlockSpec(block_shape, index_map)


def expert_kernel(x_ref, w1_ref, b1_ref, w2_ref, b2_ref, out_ref, acc_ref, *,
                  n_pos, n_total, tile_n, tiles_per_split, act_dtype):
    """One row-tile of the merged pos/neg expert forward.

    x_ref   : (TN, E)      bf16 activations (pos rows, then neg rows, then 0-pad)
    w1_ref  : (E, HH_pad)  bf16 [W1p.T | W1n.T], zero padded to 128 lanes
    b1_ref  : (1, HH_pad)  f32  [b1p | b1n]
    w2_ref  : (HH_pad, 2)  f32  col0 = w2n (rows H:2H), col1 = w2p (rows 0:H)
    b2_ref  : (1, 2)       f32  [b2n, b2p]
    out_ref : (1, 2, E)    f32  per-split partial (row0 = neg_agg, row1 = pos_agg)
    acc_ref : (2, E)       f32  accumulator scratch
    """
    c = pl.program_id(0)          # row-split (core-parallel on v7x)
    i = pl.program_id(1)          # row-tile within this split (reduction axis)

    @pl.when(i == 0)
    def _():
        acc_ref[...] = jnp.zeros_like(acc_ref)

    x = x_ref[...]                                            # (TN, E) bf16

    # One MXU pass serves both experts' hidden layers (bf16 in, f32 acc).
    pre = (jnp.dot(x, w1_ref[...], preferred_element_type=jnp.float32)
           + b1_ref[...])                                     # (TN, HH) f32
    # act_dtype=bf16 is a v6e/v7x option (2x EUP tanh rate); keep f32 on v5e.
    h = jnp.tanh(pre.astype(act_dtype))

    # Per-row scores for both experts in one tiny MXU matmul: (TN, 2),
    # col 0 = neg-expert score, col 1 = pos-expert score.
    z = (jnp.dot(h, w2_ref[...].astype(act_dtype),
                 preferred_element_type=jnp.float32) + b2_ref[...])
    s = jax.nn.sigmoid(z)          # relu(sigmoid(x)) == sigmoid(x)

    # Route each row to the correct aggregate from its global row index (the
    # expert_neg_mask and zero row-padding are already folded into x).
    row0 = (c * tiles_per_split + i) * tile_n
    ridx = row0 + lax.broadcasted_iota(jnp.int32, (tile_n, 1), 0)
    pos_member = (ridx < n_pos).astype(jnp.float32)
    neg_member = jnp.logical_and(ridx >= n_pos, ridx < n_total).astype(jnp.float32)
    sel = jnp.concatenate([neg_member, pos_member], axis=-1)  # (TN, 2)
    s = (s * sel).astype(jnp.bfloat16)

    # s^T @ x on the MXU (contract the row axis), accumulated in f32.
    acc_ref[...] += lax.dot_general(
        s, x, dimension_numbers=(((0,), (0,)), ((), ())),
        preferred_element_type=jnp.float32)

    @pl.when(i == pl.num_programs(1) - 1)
    def _():
        out_ref[...] = acc_ref[...][None]


def prepare_expert_params(params):
    """Merge / pad the two experts' weights ONCE (cache across forward calls)."""
    (w1p, b1p, w2p, b2p, w1n, b1n, w2n, b2n) = params
    H, E = w1p.shape
    hh_pad = _round_up(2 * H, 128)
    f32 = jnp.float32

    w1 = jnp.zeros((E, hh_pad), f32)
    w1 = w1.at[:, :H].set(w1p.T.astype(f32))
    w1 = w1.at[:, H:2 * H].set(w1n.T.astype(f32))
    w1 = w1.astype(jnp.bfloat16)                  # bf16 MXU-native stream

    b1 = jnp.zeros((1, hh_pad), f32)
    b1 = b1.at[0, :H].set(b1p.astype(f32))
    b1 = b1.at[0, H:2 * H].set(b1n.astype(f32))

    # Score matrix: col 0 -> neg expert, col 1 -> pos expert.
    w2 = jnp.zeros((hh_pad, 2), f32)
    w2 = w2.at[:H, 1].set(w2p.reshape(-1).astype(f32))
    w2 = w2.at[H:2 * H, 0].set(w2n.reshape(-1).astype(f32))
    b2 = jnp.stack([b2n.reshape(()), b2p.reshape(())]).reshape(1, 2).astype(f32)

    return {"w1": w1, "b1": b1, "w2": w2, "b2": b2,
            "E": E, "H": H, "hh_pad": hh_pad}


def expert_net_forward(pos, neg, expert_neg_mask, prepared, *,
                       tile_n=1024, row_splits=2, x_buffers=3,
                       act_dtype=jnp.float32):
    """pos: (Np, E) f32; neg: (Nn, E) f32; expert_neg_mask: (Np,) bool."""
    E = prepared["E"]
    hh_pad = prepared["hh_pad"]
    n_pos, n_neg = pos.shape[0], neg.shape[0]
    n_total = n_pos + n_neg
    f32, bf16 = jnp.float32, jnp.bfloat16

    # Row tile: multiple of 16 (bf16 sublane packing), 256-aligned when large.
    tile_n = int(min(tile_n, _round_up(max(n_total, 1), 16)))
    tile_n = _round_up(max(tile_n, 16), 16)
    if tile_n >= 256:
        tile_n = _round_up(tile_n, 256)

    tiles_total = _cdiv(n_total, tile_n)
    tiles_per_split = _cdiv(tiles_total, row_splits)
    n_pad = row_splits * tiles_per_split * tile_n

    # Stack [pos ; neg] into one unpadded-E bf16 slab (the dominant HBM
    # stream).  expert_neg_mask is folded in by zeroing masked pos rows
    # (their pos_agg contribution is score * 0-row == 0, identical to
    # masked_fill(score, 0)); zero row-padding keeps the tail tiles NaN-free.
    keep = (1.0 - expert_neg_mask.astype(f32))[:, None]
    x = jnp.zeros((n_pad, E), bf16)
    x = x.at[:n_pos].set((pos.astype(f32) * keep).astype(bf16))
    x = x.at[n_pos:n_total].set(neg.astype(bf16))

    kernel = functools.partial(
        expert_kernel, n_pos=n_pos, n_total=n_total, tile_n=tile_n,
        tiles_per_split=tiles_per_split, act_dtype=act_dtype)

    x_buf = x_buffers if tiles_per_split >= x_buffers else None

    grid_spec = pltpu.PrefetchScalarGridSpec(
        num_scalar_prefetch=0,
        grid=(row_splits, tiles_per_split),
        in_specs=[
            _maybe_buffered_spec(                              # x (streamed)
                (tile_n, E), lambda c, i: (c * tiles_per_split + i, 0), x_buf),
            pl.BlockSpec((E, hh_pad), lambda c, i: (0, 0)),    # w1 (resident)
            pl.BlockSpec((1, hh_pad), lambda c, i: (0, 0)),    # b1
            pl.BlockSpec((hh_pad, 2), lambda c, i: (0, 0)),    # w2
            pl.BlockSpec((1, 2), lambda c, i: (0, 0)),         # b2
        ],
        out_specs=pl.BlockSpec((1, 2, E), lambda c, i: (c, 0, 0)),
        scratch_shapes=[pltpu.VMEM((2, E), jnp.float32)],
    )

    partials = pl.pallas_call(
        kernel,
        out_shape=jax.ShapeDtypeStruct((row_splits, 2, E), jnp.float32),
        grid_spec=grid_spec,
        compiler_params=pltpu.CompilerParams(
            dimension_semantics=("parallel", "arbitrary")),
    )(x, prepared["w1"], prepared["b1"], prepared["w2"], prepared["b2"])

    # Sum the per-split partials: row0 = neg_agg, row1 = pos_agg.
    return partials.sum(axis=0)                               # (2, E)


def _reference(pos, neg, expert_neg_mask, params):
    """Pure-JAX reference of the PyTorch forward for a correctness check."""
    (w1p, b1p, w2p, b2p, w1n, b1n, w2n, b2n) = params
    ps = jax.nn.sigmoid(jnp.tanh(pos @ w1p.T + b1p) @ w2p.T + b2p)   # (Np,1)
    ps = jnp.where(expert_neg_mask[:, None], 0.0, ps)
    pos_agg = jnp.maximum(ps, 0.0).T @ pos                            # (1,E)
    ns = jax.nn.sigmoid(jnp.tanh(neg @ w1n.T + b1n) @ w2n.T + b2n)   # (Nn,1)
    neg_agg = jnp.maximum(ns, 0.0).T @ neg                            # (1,E)
    return jnp.concatenate([neg_agg, pos_agg], axis=0)                # (2,E)


if __name__ == "__main__":
    # Small shapes consistent with the module: args.embed_size=32,
    # args.expert_hid=32, Np = Nn = 24 rows.
    EMBED, HID, NP, NN = 32, 32, 24, 24

    key = jax.random.PRNGKey(0)
    ks = jax.random.split(key, 11)

    # Deterministic parameter init (PyTorch Linear shapes: weight (out, in)).
    w1p = jax.random.normal(ks[0], (HID, EMBED), jnp.float32) * 0.1
    b1p = jax.random.normal(ks[1], (HID,), jnp.float32) * 0.1
    w2p = jax.random.normal(ks[2], (1, HID), jnp.float32) * 0.1
    b2p = jax.random.normal(ks[3], (1,), jnp.float32) * 0.1
    w1n = jax.random.normal(ks[4], (HID, EMBED), jnp.float32) * 0.1
    b1n = jax.random.normal(ks[5], (HID,), jnp.float32) * 0.1
    w2n = jax.random.normal(ks[6], (1, HID), jnp.float32) * 0.1
    b2n = jax.random.normal(ks[7], (1,), jnp.float32) * 0.1
    params = (w1p, b1p, w2p, b2p, w1n, b1n, w2n, b2n)

    pos = jax.random.normal(ks[8], (NP, EMBED), jnp.float32)
    neg = jax.random.normal(ks[9], (NN, EMBED), jnp.float32)
    expert_neg_mask = jax.random.bernoulli(ks[10], 0.3, (NP,))

    # Hoisted / cached merged-weight prep (static across forward calls).
    prepared = prepare_expert_params(params)

    # tile_n=16 -> grid (2 splits, 2 row-tiles each) at these tiny shapes,
    # exercising both the per-split accumulation (pl.when init/finalize) and
    # the partial-sum path.
    out = expert_net_forward(pos, neg, expert_neg_mask, prepared,
                             tile_n=16, row_splits=2)
    out = jax.block_until_ready(out)

    ref = _reference(pos, neg, expert_neg_mask, params)
    assert out.shape == (2, EMBED)
    # bf16 streaming of x / the s^T @ x matmul loosens the tolerance slightly.
    assert jnp.allclose(out, ref, atol=3e-2, rtol=3e-2), "mismatch vs reference"

    print("KERNEL_OK")
</pallas_src>

<mosaic_0001>
module attributes {stable_mosaic.version = 11 : i64} {
  func.func @expert_kernel(%arg0: i32, %arg1: i32, %arg2: memref<16x32xbf16, #tpu.memory_space<vmem>>, %arg3: memref<32x128xbf16, #tpu.memory_space<vmem>>, %arg4: memref<1x128xf32, #tpu.memory_space<vmem>>, %arg5: memref<128x2xf32, #tpu.memory_space<vmem>>, %arg6: memref<1x2xf32, #tpu.memory_space<vmem>>, %arg7: memref<1x2x32xf32, #tpu.memory_space<vmem>>, %arg8: memref<2x32xf32, #tpu.memory_space<vmem>>) attributes {dimension_semantics = [#tpu.dimension_semantics<parallel>, #tpu.dimension_semantics<arbitrary>], iteration_bounds = array<i64: 2, 2>, scalar_prefetch = 0 : i64, scratch_operands = 1 : i64, tpu.core_type = #tpu.core_type<tc>, window_params = [{transform_indices = @transform_0, window_bounds = array<i64: 16, 32>}, {pipeline_mode = #tpu.pipeline_mode<synchronous>, transform_indices = @transform_1, window_bounds = array<i64: 32, 128>}, {pipeline_mode = #tpu.pipeline_mode<synchronous>, transform_indices = @transform_2, window_bounds = array<i64: 1, 128>}, {pipeline_mode = #tpu.pipeline_mode<synchronous>, transform_indices = @transform_3, window_bounds = array<i64: 128, 2>}, {pipeline_mode = #tpu.pipeline_mode<synchronous>, transform_indices = @transform_4, window_bounds = array<i64: 1, 2>}, {transform_indices = @transform_5, window_bounds = array<i64: 1, 2, 32>}]} {
    %c0_i32 = arith.constant 0 : i32
    %0 = arith.cmpi eq, %arg1, %c0_i32 : i32
    %1 = arith.extui %0 : i1 to i32
    %c0_i32_0 = arith.constant 0 : i32
    %2 = arith.cmpi ne, %1, %c0_i32_0 : i32
    scf.if %2 {
      %cst_19 = arith.constant 0.000000e+00 : f32
      %47 = vector.broadcast %cst_19 : f32 to vector<2x32xf32>
      %c0_20 = arith.constant 0 : index
      %c0_21 = arith.constant 0 : index
      %48 = vector.load %arg8[%c0_20, %c0_21] : memref<2x32xf32, #tpu.memory_space<vmem>>, vector<2x32xf32>
      tpu.vector_store %arg8[%c0_20, %c0_21], %47 {strides = array<i32>} : memref<2x32xf32, #tpu.memory_space<vmem>>, vector<2x32xf32>,
    } else {
    }
    %c0 = arith.constant 0 : index
    %c0_1 = arith.constant 0 : index
    %3 = vector.load %arg2[%c0, %c0_1] : memref<16x32xbf16, #tpu.memory_space<vmem>>, vector<16x32xbf16>
    %c0_2 = arith.constant 0 : index
    %c0_3 = arith.constant 0 : index
    %4 = vector.load %arg3[%c0_2, %c0_3] : memref<32x128xbf16, #tpu.memory_space<vmem>>, vector<32x128xbf16>
    %cst = arith.constant dense<0.000000e+00> : vector<16x128xf32>
    %5 = tpu.matmul %3, %4, %cst {dimension_numbers = #tpu.dot_dimension_numbers<[1], [0], [0], [1], [0, 0, 1, 1], [], []>} : vector<16x32xbf16>, vector<32x128xbf16>, vector<16x128xf32> -> vector<16x128xf32>
    %c0_4 = arith.constant 0 : index
    %c0_5 = arith.constant 0 : index
    %6 = vector.load %arg4[%c0_4, %c0_5] : memref<1x128xf32, #tpu.memory_space<vmem>>, vector<1x128xf32>
    %7 = vector.broadcast %6 : vector<1x128xf32> to vector<16x128xf32>
    %8 = arith.addf %5, %7 : vector<16x128xf32>
    %9 = math.tanh %8 : vector<16x128xf32>
    %c0_6 = arith.constant 0 : index
    %c0_7 = arith.constant 0 : index
    %10 = vector.load %arg5[%c0_6, %c0_7] : memref<128x2xf32, #tpu.memory_space<vmem>>, vector<128x2xf32>
    %cst_8 = arith.constant dense<0.000000e+00> : vector<16x2xf32>
    %11 = tpu.matmul %9, %10, %cst_8 {dimension_numbers = #tpu.dot_dimension_numbers<[1], [0], [0], [1], [0, 0, 1, 1], [], []>} : vector<16x128xf32>, vector<128x2xf32>, vector<16x2xf32> -> vector<16x2xf32>
    %c0_9 = arith.constant 0 : index
    %c0_10 = arith.constant 0 : index
    %12 = vector.load %arg6[%c0_9, %c0_10] : memref<1x2xf32, #tpu.memory_space<vmem>>, vector<1x2xf32>
    %13 = vector.broadcast %12 : vector<1x2xf32> to vector<16x2xf32>
    %14 = arith.addf %11, %13 : vector<16x2xf32>
    %15 = arith.negf %14 : vector<16x2xf32>
    %16 = math.exp %15 : vector<16x2xf32>
    %cst_11 = arith.constant 1.000000e+00 : f32
    %17 = vector.broadcast %cst_11 : f32 to vector<16x2xf32>
    %18 = arith.addf %17, %16 : vector<16x2xf32>
    %19 = arith.divf %17, %18 : vector<16x2xf32>
    %c2_i32 = arith.constant 2 : i32
    %20 = arith.muli %arg0, %c2_i32 : i32
    %21 = arith.addi %20, %arg1 : i32
    %c16_i32 = arith.constant 16 : i32
    %22 = arith.muli %21, %c16_i32 : i32
    %23 = tpu.iota {dimensions = array<i32: 0>} : vector<16x1xi32>
    %24 = vector.broadcast %22 : i32 to vector<16x1xi32>
    %25 = arith.addi %24, %23 : vector<16x1xi32>
    %c24_i32 = arith.constant 24 : i32
    %26 = vector.broadcast %c24_i32 : i32 to vector<16x1xi32>
    %27 = arith.cmpi slt, %25, %26 : vector<16x1xi32>
    %28 = arith.extui %27 : vector<16x1xi1> to vector<16x1xi32>
    %29 = arith.sitofp %28 : vector<16x1xi32> to vector<16x1xf32>
    %c24_i32_12 = arith.constant 24 : i32
    %30 = vector.broadcast %c24_i32_12 : i32 to vector<16x1xi32>
    %31 = arith.cmpi sge, %25, %30 : vector<16x1xi32>
    %c48_i32 = arith.constant 48 : i32
    %32 = vector.broadcast %c48_i32 : i32 to vector<16x1xi32>
    %33 = arith.cmpi slt, %25, %32 : vector<16x1xi32>
    %34 = arith.andi %31, %33 : vector<16x1xi1>
    %35 = arith.extui %34 : vector<16x1xi1> to vector<16x1xi32>
    %36 = arith.sitofp %35 : vector<16x1xi32> to vector<16x1xf32>
    %37 = tpu.concatenate %36, %29 in 1 : vector<16x1xf32>, vector<16x1xf32> -> vector<16x2xf32>
    %38 = arith.mulf %19, %37 : vector<16x2xf32>
    %39 = arith.truncf %38 : vector<16x2xf32> to vector<16x2xbf16>
    %c0_13 = arith.constant 0 : index
    %c0_14 = arith.constant 0 : index
    %40 = vector.load %arg8[%c0_13, %c0_14] : memref<2x32xf32, #tpu.memory_space<vmem>>, vector<2x32xf32>
    %cst_15 = arith.constant dense<0.000000e+00> : vector<2x32xf32>
    %41 = tpu.matmul %39, %3, %cst_15 {dimension_numbers = #tpu.dot_dimension_numbers<[0], [0], [1], [1], [0, 1, 1, 1], [], []>} : vector<16x2xbf16>, vector<16x32xbf16>, vector<2x32xf32> -> vector<2x32xf32>
    %42 = arith.addf %40, %41 : vector<2x32xf32>
    %c0_16 = arith.constant 0 : index
    %c0_17 = arith.constant 0 : index
    %43 = vector.load %arg8[%c0_16, %c0_17] : memref<2x32xf32, #tpu.memory_space<vmem>>, vector<2x32xf32>
    tpu.vector_store %arg8[%c0_16, %c0_17], %42 {strides = array<i32>} : memref<2x32xf32, #tpu.memory_space<vmem>>, vector<2x32xf32>,
    %c1_i32 = arith.constant 1 : i32
    %44 = arith.cmpi eq, %arg1, %c1_i32 : i32
    %45 = arith.extui %44 : i1 to i32
    %c0_i32_18 = arith.constant 0 : i32
    %46 = arith.cmpi ne, %45, %c0_i32_18 : i32
    scf.if %46 {
      %c0_19 = arith.constant 0 : index
      %c0_20 = arith.constant 0 : index
      %47 = vector.load %arg8[%c0_19, %c0_20] : memref<2x32xf32, #tpu.memory_space<vmem>>, vector<2x32xf32>
      %48 = vector.shape_cast %47 : vector<2x32xf32> to vector<1x2x32xf32>
      %c0_21 = arith.constant 0 : index
      %c0_22 = arith.constant 0 : index
      %c0_23 = arith.constant 0 : index
      %49 = vector.load %arg7[%c0_21, %c0_22, %c0_23] : memref<1x2x32xf32, #tpu.memory_space<vmem>>, vector<1x2x32xf32>
      tpu.vector_store %arg7[%c0_21, %c0_22, %c0_23], %48 {strides = array<i32>} : memref<1x2x32xf32, #tpu.memory_space<vmem>>, vector<1x2x32xf32>,
    } else {
    }
    return
  }
  func.func @transform_0(%arg0: i32, %arg1: i32) -> (i32, i32) {
    %c2_i32 = arith.constant 2 : i32
    %0 = arith.muli %arg0, %c2_i32 : i32
    %1 = arith.addi %0, %arg1 : i32
    %c0_i32 = arith.constant 0 : i32
    %c0_i32_0 = arith.constant 0 : i32
    return %1, %c0_i32 : i32, i32
  }
  func.func @transform_1(%arg0: i32, %arg1: i32) -> (i32, i32) {
    %c0_i32 = arith.constant 0 : i32
    %c0_i32_0 = arith.constant 0 : i32
    %c0_i32_1 = arith.constant 0 : i32
    return %c0_i32, %c0_i32_0 : i32, i32
  }
  func.func @transform_2(%arg0: i32, %arg1: i32) -> (i32, i32) {
    %c0_i32 = arith.constant 0 : i32
    %c0_i32_0 = arith.constant 0 : i32
    %c0_i32_1 = arith.constant 0 : i32
    return %c0_i32, %c0_i32_0 : i32, i32
  }
  func.func @transform_3(%arg0: i32, %arg1: i32) -> (i32, i32) {
    %c0_i32 = arith.constant 0 : i32
    %c0_i32_0 = arith.constant 0 : i32
    %c0_i32_1 = arith.constant 0 : i32
    return %c0_i32, %c0_i32_0 : i32, i32
  }
  func.func @transform_4(%arg0: i32, %arg1: i32) -> (i32, i32) {
    %c0_i32 = arith.constant 0 : i32
    %c0_i32_0 = arith.constant 0 : i32
    %c0_i32_1 = arith.constant 0 : i32
    return %c0_i32, %c0_i32_0 : i32, i32
  }
  func.func @transform_5(%arg0: i32, %arg1: i32) -> (i32, i32, i32) {
    %c0_i32 = arith.constant 0 : i32
    %c0_i32_0 = arith.constant 0 : i32
    %c0_i32_1 = arith.constant 0 : i32
    return %arg0, %c0_i32, %c0_i32_0 : i32, i32, i32
  }
}

</mosaic_0001>

<bundles_post_ra>
// kernel: tpu_custom_call.1
= control target key start
LH: loop header
LB: loop body
LE: loop exit
PB: predicated region body
PF: predicated region fallthrough
CT: control target
= control target key end

     0   :  { %s1018_s0 = inlined_call_operand.vmem [shape: bf16[64,32], index: 0, kind: input, shape index: {}]   ;;  %s1019_s1 = inlined_call_operand.vmem [shape: bf16[32,128], index: 1, kind: input, shape index: {}]   ;;  %s1020_s2 = inlined_call_operand.vmem [shape: f32[1,128], index: 2, kind: input, shape index: {}]   ;;  %s1021_s3 = inlined_call_operand.vmem [shape: f32[128,2], index: 3, kind: input, shape index: {}]   ;;  %s1022_s4 = inlined_call_operand.vmem [shape: f32[1,2], index: 4, kind: input, shape index: {}]   ;;  %s1023_s5 = inlined_call_operand.hbm [shape: f32[2,2,32], index: 5, kind: output, shape index: {}]  }
   0x1   :  { %1026 = sst [smem:[#allocation6_spill]] %s1018_s0 }
   0x2   :  { %10 = vsyncpa [#allocation4], 0 }
   0x3   :  { %12 = vsyncpa [#allocation4 + $0x1], 0  ;;  %s821_s18 = smov 0   ;;  %s823_s19 = smov 0  }
   0x4   :  { %s825_s20 = smov 0   ;;  %s827_s21 = smov 0  }
   0x5   :  { %s829_s22 = smov 0   ;;  %s831_s23 = smov 0  }
   0x6   :  { %s833_s24 = smov 0   ;;  %s835_s25 = smov 0  }
   0x7 LB: > { %s547_s26 = sadd.s32 4294967295, %s787_s25   ;;  %s548_s27 = sadd.s32 4294967294, %s787_s25   ;;  %s787_s25 = sphi %s835_s25, %s18_s25   ;;  %s783_s24 = sphi %s833_s24, %s1040_s24   ;;  %s779_s23 = sphi %s831_s23, %s1039_s23   ;;  %s775_s22 = sphi %s829_s22, %s1038_s22   ;;  %s771_s21 = sphi %s827_s21, %s1037_s21   ;;  %s767_s20 = sphi %s825_s20, %s1036_s20   ;;  %s763_s19 = sphi %s823_s19, %s1035_s19   ;;  %s759_s18 = sphi %s821_s18, %s1034_s18  }
   0x8   : > { %s27_s28 = sadd.s32 1, %s779_s23  ;;  %s30_s29 = sadd.s32 1, %s783_s24 }
   0x9   : > { %p28_p0 = scmp.ge.s32.totalorder %s27_s28, 2  ;;  %p161_p1 = scmp.ne.s32.totalorder %s767_s20, %s763_s19 }
   0xa   : > { %p162_p2 = scmp.eq.s32.totalorder %s547_s26, 3  ;;  %p167_p4 = scmp.ne.s32.totalorder %s763_s19, %s759_s18 }
   0xb   : > { %s1042_s28 = smov (%p28_p0, %s27_s28), 0  ;;  %s1044_s29 = smov (!%p28_p0, %s30_s29), %s783_s24 }
   0xc   : > { %p870_p3 = por %p162_p2, %p161_p1  ;;  %p32_p5 = scmp.ge.s32.totalorder %s1044_s29, 2 }
   0xd   : > { %p168_p6 = scmp.eq.s32.totalorder %s548_s27, 3  ;;  %p553_p7 = scmp.ge.s32.totalorder %s787_s25, 1 }
   0xe   : > { %p211_p8 = scmp.lt.s32.totalorder %s787_s25, 5  ;;  %s1046_s29 = smov (%p32_p5, %s1044_s29), 0 }
   0xf   : > { %p880_p9 = por %p168_p6, %p167_p4  ;;  %s148_s7 = ssub.s32 %s783_s24, %s1046_s29 }
  0x10   : > { %p212_p10 = pnand %p553_p7, %p211_p8  ;;  %s151_s8 = sadd.s32 1, %s767_s20 }
  0x11   : > { %p149_p11 = scmp.eq.s32.totalorder %s148_s7, 0  ;;  %s1024_s10 = sand.u32 (!%p212_p10), 1, %s763_s19  }
  0x12   : > { %215 = sbr.rel (%p212_p10) target bundleno = 679 (0x2a7), region = 40  ;;  %s1025_s11 = sshll.u32 (!%p212_p10), %s775_s22, 1 }
  0x13   : > { %s888_s9 = scalar_select %p149_p11, %s767_s20, %s151_s8  }
  0x14   : > { %s894_s12 = sshll.u32 (!%p212_p10), %s1024_s10, 1  ;;  %s899_s13 = sadd.s32 (!%p212_p10), %s771_s21, %s1025_s11 }
  0x15   : > { %s556_s14 = sshll.u32 (!%p212_p10), %s899_s13, 1  ;;  %s1029_s0 = sld [smem:[#allocation6_spill]] (!%p212_p10) }
  0x16   : > { %p244_p12 = scmp.lt.s32.totalorder (!%p212_p10), %s556_s14, 7  ;;  %p558_p13 = scmp.ne.s32.totalorder (!%p212_p10), %s771_s21, 0 }
  0x18   : > { %s1048_s14 = smov (!%p244_p12, %s556_s14), 7  ;;  %255 = sbr.rel (%p558_p13) target bundleno = 31 (0x1f), region = 44 }
  0x19   : > { %s557_s15 = sshll.u32 %s1048_s14, 2 }
  0x1b   : > { %s247_s26 = scalar_lea.vmem %s1029_s0, %s557_s15 }
  0x1d   : > { %vm256_vm0 = vcmask 254976   ;;  %v789_v0 = vmov 0.0  }
  0x1e   : > { %257 = vst.msk [vmem:[#allocation2] sm:$0x3] %vm256_vm0, %v789_v0 }
  0x1f PF: > { %v588_v1 = vld [vmem:[%s1019_s1 + $0x8] sm:$0xff]  ;;  %v586_v2 = vld [vmem:[%s247_s26] sm:$0xff]  ;;  %v320_v3 = vld [vmem:[%s1021_s3 + $0x78] sm:$0xff]  ;;  %vm285_vm1 = vcmask 261120   ;;  %v389_v36 = vlaneseq  ;;  %s575_s16 = sshll.u32 %s899_s13, 4  ;;  %v790_v52 = vmov 0.0  }
  0x20   : > { %v319_v4 = vld [vmem:[%s1021_s3 + $0x70] sm:$0xff]  ;;  %295 = vmatpush.bf16.msra.mxu0 %v588_v1  ;;  %v587_v5 = vld [vmem:[%s1019_s1] sm:$0xff]  ;;  %325 = vmatpush.msra.mxu1 %v320_v3  ;;  %v318_v6 = vld [vmem:[%s1021_s3 + $0x68] sm:$0xff]  ;;  %v392_v41 = vstv %s575_s16  ;;  %vm411_vm13 = vcmask 7168   ;;  %p581_p0 = scmp.ne.s32.totalorder %s771_s21, 1 }
  0x21   : > { %589 = vmatpush.msra.mxu3 %v320_v3  ;;  %446 = vmatpush.bf16.msra.mxu2 %v586_v2  ;;  %v317_v7 = vld [vmem:[%s1021_s3 + $0x60] sm:$0xff]  ;;  %v316_v8 = vld [vmem:[%s1021_s3 + $0x58] sm:$0xff]  ;;  %v315_v9 = vld [vmem:[%s1021_s3 + $0x50] sm:$0xff]  ;;  %v390_v38 = vshrl.u32 %v389_v36, 7  ;;  %s1030_s13 = scalar_lea.vmem (!%p581_p0), [#allocation3], %s894_s12 }
  0x22   : > { %326 = vmatpush.msra.mxu1 %v319_v4  ;;  %v314_v10 = vld [vmem:[%s1021_s3 + $0x48] sm:$0xff]  ;;  %v313_v11 = vld [vmem:[%s1021_s3 + $0x40] sm:$0xff]  ;;  %v312_v12 = vld [vmem:[%s1021_s3 + $0x38] sm:$0xff] }
  0x23   : > { %590 = vmatpush.msra.mxu3 %v319_v4  ;;  %v311_v13 = vld [vmem:[%s1021_s3 + $0x30] sm:$0xff]  ;;  %v310_v14 = vld [vmem:[%s1021_s3 + $0x28] sm:$0xff]  ;;  %v309_v15 = vld [vmem:[%s1021_s3 + $0x20] sm:$0xff]  ;;  %v391_v40 = vadd.s32 8, %v390_v38  ;;  %v393_v45 = vadd.s32 %v392_v41, %v390_v38 }
  0x24   : > { %296 = vmatpush.bf16.msra.mxu0 %v587_v5  ;;  %327 = vmatpush.msra.mxu1 %v318_v6  ;;  %v308_v16 = vld [vmem:[%s1021_s3 + $0x18] sm:$0xff]  ;;  %v307_v17 = vld [vmem:[%s1021_s3 + $0x10] sm:$0xff]  ;;  %v306_v18 = vld [vmem:[%s1021_s3 + $0x8] sm:$0xff] }
  0x25   : > { %591 = vmatpush.msra.mxu3 %v318_v6  ;;  %v305_v19 = vld [vmem:[%s1021_s3] sm:$0xff]  ;;  %v394_v46 = vadd.s32 %v392_v41, %v391_v40  ;;  %vm401_vm2 = vcmp.ge.s32.totalorder %v393_v45, 24  ;;  %vm403_vm3 = vcmp.lt.s32.totalorder %v393_v45, 48  ;;  %vm395_vm6 = vcmp.lt.s32.totalorder %v393_v45, 24 }
  0x26   : > { %328 = vmatpush.msra.mxu1 %v317_v7  ;;  %v679_v20 = vld [vmem:[%s1020_s2] ss:$0 sm:$0xff]  ;;  %vm405_vm7 = vmand %vm401_vm2, %vm403_vm3  ;;  %v576_v53 = vsel %vm395_vm6, 1.0, %v790_v52  ;;  %vm435_vm3 = vcmask 130048  }
  0x27   : > { %571 = vmatmul.msk.bf16.vlgmr.msra.gmra.mxu0 %vm285_vm1, %v586_v2  ;;  %592 = vmatpush.msra.mxu3 %v317_v7  ;;  %v680_v27 = vld [vmem:[%s1022_s4] ss:$0 sm:$0xff]  ;;  %vm402_vm4 = vcmp.ge.s32.totalorder %v394_v46, 24  ;;  %vm404_vm5 = vcmp.lt.s32.totalorder %v394_v46, 48  ;;  %vm396_vm9 = vcmp.lt.s32.totalorder %v394_v46, 24  ;;  %v578_v56 = vsel %vm405_vm7, 1.0, %v790_v52 }
  0x28   : > { %329 = vmatpush.msra.mxu1 %v316_v8  ;;  %vm406_vm10 = vmand %vm402_vm4, %vm404_vm5  ;;  %v577_v58 = vsel %vm396_vm9, 1.0, %v790_v52  ;;  %v412_v3 = vsel %vm411_vm13, %v578_v56, %v576_v53  ;;  %vm453_vm4 = vcmask 254976  }
  0x29   : > { %593 = vmatpush.msra.mxu3 %v316_v8  ;;  %v579_v59 = vsel %vm406_vm10, 1.0, %v790_v52 }
  0x2a   : > { %330 = vmatpush.msra.mxu1 %v315_v9  ;;  %v413_v4 = vsel %vm411_vm13, %v579_v59, %v577_v58 }
  0x2b   : > { %594 = vmatpush.msra.mxu3 %v315_v9 }
  0x2c   : > { %331 = vmatpush.msra.mxu1 %v314_v10 }
  0x2d   : > { %595 = vmatpush.msra.mxu3 %v314_v10 }
  0x2e   : > { %332 = vmatpush.msra.mxu1 %v313_v11 }
  0x2f   : > { %596 = vmatpush.msra.mxu3 %v313_v11  ;;  %v417_v11 = vld [vmem:[#allocation2] sm:$0x3] }
  0x30   : > { %333 = vmatpush.msra.mxu1 %v312_v12 }
  0x31   : > { %597 = vmatpush.msra.mxu3 %v312_v12 }
  0x32   : > { %334 = vmatpush.msra.mxu1 %v311_v13 }
  0x33   : > { %598 = vmatpush.msra.mxu3 %v311_v13 }
  0x34   : > { %335 = vmatpush.msra.mxu1 %v310_v14 }
  0x35   : > { %599 = vmatpush.msra.mxu3 %v310_v14 }
  0x36   : > { %336 = vmatpush.msra.mxu1 %v309_v15 }
  0x37   : > { %600 = vmatpush.msra.mxu3 %v309_v15 }
  0x38   : > { %337 = vmatpush.msra.mxu1 %v308_v16 }
  0x39   : > { %601 = vmatpush.msra.mxu3 %v308_v16 }
  0x3a   : > { %338 = vmatpush.msra.mxu1 %v307_v17 }
  0x3b   : > { %602 = vmatpush.msra.mxu3 %v307_v17 }
  0x3c   : > { %339 = vmatpush.msra.mxu1 %v306_v18 }
  0x3d   : > { %603 = vmatpush.msra.mxu3 %v306_v18 }
  0x3e   : > { %340 = vmatpush.msra.mxu1 %v305_v19 }
  0x3f   : > { %604 = vmatpush.msra.mxu3 %v305_v19 }
  0xa4   : > { %v298_v21 = vpop.f32.mrf.mxu0 }
  0xa5   : > { %v299_v22 = vadd.f32 %v679_v20, %v298_v21 }
  0xa7   : > { %681 = vtanh.f32 %v299_v22 }
  0xac   : > { %v300_v23 = vpop.f32.mrf.mxu0 }
  0xad   : > { %v682_v24 = vpop.eup %681  ;;  %v301_v25 = vadd.f32 %v679_v20, %v300_v23 }
  0xae   : > { %341 = vmatmul.f32.vlgmr.msra.gmra.mxu1 %v682_v24 }
  0xaf   : > { %683 = vtanh.f32 %v301_v25 }
  0xb5   : > { %v684_v26 = vpop.eup %683 }
  0xb6   : > { %344 = vmatmul.f32.vlgmr.msra.gmra.mxu3 %v684_v26 }
 0x12b   : > { %v342_v28 = vpop.f32.mrf.mxu1 }
 0x12c   : > { %v343_v29 = vadd.f32 %v680_v27, %v342_v28 }
 0x12e   : > { %v572_v30 = vmul.f32 -1.442695, %v343_v29 }
 0x130   : > { %685 = vpow2.f32 %v572_v30 }
 0x136   : > { %v686_v31 = vpop.eup %685 }
 0x137   : > { %v354_v32 = vadd.f32 1.0, %v686_v31 }
 0x139   : > { %687 = vrcp.f32 %v354_v32  ;;  %v345_v33 = vpop.f32.mrf.mxu3  ;;  %v367_v51 = vand.u32 2147483648, %v354_v32  ;;  %vm361_vm11 = vweird.f32 %v354_v32  ;;  %v365_v54 = vand.u32 2147483647, %v354_v32 }
 0x13a   : > { %v346_v34 = vadd.f32 %v680_v27, %v345_v33 }
 0x13b   : > { %v368_v63 = vor.u32 1.1754944e-38, %v367_v51  ;;  %vm366_vm15 = vcmp.eq.f32.partialorder %v365_v54, 8.507059e+37 }
 0x13c   : > { %v573_v35 = vmul.f32 -1.442695, %v346_v34 }
 0x13e   : > { %689 = vpow2.f32 %v573_v35 }
 0x13f   : > { %v688_v37 = vpop.eup %687 }
 0x140   : > { %v357_v39 = vmul.f32 %v688_v37, %v354_v32  ;;  %vm362_vm8 = vweird.f32 %v688_v37 }
 0x141   : > { %vm363_vm12 = vmor %vm361_vm11, %vm362_vm8 }
 0x142   : > { %v358_v44 = vsub.f32 1.0, %v357_v39 }
 0x144   : > { %v690_v42 = vpop.eup %689  ;;  %v359_v47 = vmul.f32 %v688_v37, %v358_v44 }
 0x145   : > { %v355_v43 = vadd.f32 1.0, %v690_v42 }
 0x146   : > { %v360_v49 = vadd.f32 %v688_v37, %v359_v47 }
 0x147   : > { %691 = vrcp.f32 %v355_v43  ;;  %v382_v57 = vand.u32 2147483648, %v355_v43  ;;  %v380_v62 = vand.u32 2147483647, %v355_v43  ;;  %vm376_vm0 = vweird.f32 %v355_v43 }
 0x148   : > { %v364_v60 = vsel %vm363_vm12, %v688_v37, %v360_v49 }
 0x149   : > { %v369_v1 = vsel %vm366_vm15, %v368_v63, %v364_v60  ;;  %v383_v2 = vor.u32 1.1754944e-38, %v382_v57  ;;  %vm381_vm2 = vcmp.eq.f32.partialorder %v380_v62, 8.507059e+37 }
 0x14a   : > { %v414_v7 = vmul.f32 %v412_v3, %v369_v1 }
 0x14d   : > { %v692_v48 = vpop.eup %691 }
 0x14e   : > { %v372_v50 = vmul.f32 %v692_v48, %v355_v43  ;;  %vm377_vm14 = vweird.f32 %v692_v48 }
 0x14f   : > { %vm378_vm1 = vmor %vm376_vm0, %vm377_vm14 }
 0x150   : > { %v373_v55 = vsub.f32 1.0, %v372_v50 }
 0x152   : > { %v374_v61 = vmul.f32 %v692_v48, %v373_v55 }
 0x154   : > { %v375_v0 = vadd.f32 %v692_v48, %v374_v61 }
 0x156   : > { %v379_v5 = vsel %vm378_vm1, %v692_v48, %v375_v0 }
 0x157   : > { %v384_v6 = vsel %vm381_vm2, %v383_v2, %v379_v5 }
 0x158   : > { %v415_v8 = vmul.f32 %v413_v4, %v384_v6 }
 0x15a   : > { %v416_v9 = vpack.c.bf16 %v415_v8, %v414_v7 }
 0x15c   : > { %418 = vxpose.xlu0.c.b16.start.end [1/1] (short) (narrow) %v416_v9, 16 }
 0x208   : > { %v426_v10 = vpop.trf.xlu0 }
 0x209   : > { %580 = vmatmul.msk.bf16.vlgmr.msra.gmra.mxu2 %vm435_vm3, %v426_v10 }
 0x28c   : > { %v448_v12 = vpop.f32.mrf.mxu2 }
 0x28d   : > { %v452_v13 = vadd.f32 %v448_v12, %v417_v11 }
 0x28f   : > { %454 = vst.msk [vmem:[#allocation2] sm:$0x3] %vm453_vm4, %v452_v13 }
 0x290   : > { %458 = sbr.rel (%p581_p0) target bundleno = 664 (0x298), region = 48 }
 0x294   : > { %v450_v14 = vpop.f32.mrf.mxu2 }
 0x296   : > { %v459_v15 = vld [vmem:[#allocation2] sm:$0x3] }
 0x297   : > { %460 = vst.msk [vmem:[%s1030_s13] sm:$0x3] %vm453_vm4, %v459_v15 }
 0x298 PF: > { %s1031_s15 = sshll.u32 %s775_s22, 1  ;;  %s1032_s11 = scalar_lea.vmem [#allocation3], %s894_s12 }
 0x299   : > { %s472_s10 = scalar_lea.hbm %s1023_s5, %s1031_s15  ;;  %s474_s7 = sshll.u32 %s1032_s11, 4  ;;  %s475_s7 = int_to_ptr.vmem [resolvable:$true] %s474_s7 }
 0x29a   : > { %s476_s0 = sshll.u32 %s472_s10, 4  ;;  %s1033_s21 = sand.u32 1, %s763_s19   ;;  %s477_s0 = int_to_ptr.hbm [resolvable:$true] %s476_s0 }
 0x29b   : > { %s462_s27 = scalar_lea.sflag [#allocation4], %s1033_s21  ;;  %s707_s8 = sshra.s32 %s477_s0, 4  ;;  %s708_s8 = int_to_ptr.hbm [resolvable:$true] %s707_s8 }
 0x29c   : > { %s709_s14 = scalar_lea.hbm %s708_s8, 2  ;;  %s713_s13 = scalar_lea.hbm %s1023_s5, 4 }
 0x29d   : > { %p710_p1 = scmp.ne.s32.totalorder %s708_s8, %s709_s14  ;;  %p714_p5 = scmp.lt.s32.totalorder %s708_s8, %s1023_s5 }
 0x29e   : > { %p715_p6 = scmp.lt.s32.totalorder %s713_s13, %s709_s14 }
 0x29f   : > { %p711_p2 = pnand %p710_p1, %p870_p3 }
 0x2a0   : > { %p716_p7 = por %p715_p6, %p714_p5 }
 0x2a1   : > { %p712_p4 = pneg %p711_p2 }
 0x2a3   : > { %p717_p8 = pnand %p716_p7, %p712_p4 }
 0x2a5   : > { %720 = shalt.err (!%p717_p8)
}
 0x2a6   : > { %605 = dma.vmem_to_hbm [thread:$0]  (%p870_p3), %s475_s7, 32, %s477_s0, %s462_s27  }
 0x2a7 PF: > { %p611_p10 = scmp.ge.s32.totalorder %s787_s25, 2  ;;  %s488_s12 = sand.u32 1, %s759_s18  }
 0x2a8   : > { %s489_s26 = scalar_lea.sflag [#allocation4], %s488_s12 }
 0x2a9   : > { %p608_p11 = pnand %p611_p10, %p880_p9 }
 0x2ab   : > { %p609_p12 = pneg %p608_p11 }
 0x2ad   : > { %754 = dma.done.wait (%p609_p12), %s489_s26, 32  }
 0x2ae   : > { %756 = vsyncadd (%p609_p12), %s489_s26, 4294967264  ;;  %s18_s25 = sadd.s32 1, %s787_s25   ;;  %s1034_s18 = smov %s763_s19 }
 0x2af   : > { %p15_p13 = scmp.ge.s32.totalorder %s18_s25, 6   ;;  %s1035_s19 = smov %s767_s20 }
 0x2b0   : > { %s1036_s20 = smov %s888_s9  ;;  %s1037_s21 = smov %s779_s23 }
 0x2b1   : > { %s1038_s22 = smov %s783_s24  ;;  %s1039_s23 = smov %s1042_s28 }
 0x2b2   : > { %s1040_s24 = smov %s1046_s29  ;;  %17 = sbr.rel (!%p15_p13) target bundleno = 7 (0x7), region = 83 }
 0x2b7   :  { %495 = vsyncpa [#allocation4], 1 }
 0x2b8   :  { %497 = vsyncpa [#allocation4 + $0x1], 1 }

</bundles_post_ra>
